<compile_context>
chip_gen: v6e
topology: v6e:2x2x1
jax: 0.10.0
libtpu: 0.0.40
codegen_flags: <defaults>
</compile_context>

<pallas_src>
import functools

import jax
import jax.numpy as jnp
from jax import lax
from jax.experimental import pallas as pl
from jax.experimental.pallas import tpu as pltpu


def _round_up(x, m):
    return ((x + m - 1) // m) * m


def _label_smoothing_kernel(pred_ref, gath_ref, out_ref,
                            m_ref, l_ref, s_ref,
                            *, confidence, smooth_over_c, n_rows, n_cols,
                            tb, tc, n_col_pad, n_row_pad):
    b = pl.program_id(0)
    c = pl.program_id(1)
    nc = pl.num_programs(1)

    # Init running stats at the first class block of each batch block.
    @pl.when(c == 0)
    def _():
        m_ref[...] = jnp.full_like(m_ref, -jnp.inf)   # running max
        l_ref[...] = jnp.zeros_like(l_ref)            # running sum(exp(x - m))
        s_ref[...] = jnp.zeros_like(s_ref)            # running sum(x)

    x = pred_ref[...].astype(jnp.float32)             # (tb, tc)

    def accumulate(x_neg, x_zero):
        m_prev = m_ref[...]
        m_new = jnp.maximum(m_prev, jnp.max(x_neg, axis=-1, keepdims=True))
        alpha = jnp.exp(m_prev - m_new)
        l_ref[...] = alpha * l_ref[...] + jnp.sum(jnp.exp(x_neg - m_new),
                                                  axis=-1, keepdims=True)
        m_ref[...] = m_new
        s_ref[...] += jnp.sum(x_zero, axis=-1, keepdims=True)

    if n_col_pad == 0:
        # No class padding: skip the validity mask entirely.
        accumulate(x, x)
    else:
        # Only the last class block can hold padded columns (Cp - C < tc).
        @pl.when(c < nc - 1)
        def _():
            accumulate(x, x)

        @pl.when(c == nc - 1)
        def _():
            # Loop-invariant iota; shift the comparand instead of the iota.
            col = lax.broadcasted_iota(jnp.int32, (tb, tc), 1)
            valid = col < (n_cols - c * tc)
            accumulate(jnp.where(valid, x, -jnp.inf),
                       jnp.where(valid, x, 0.0))

    # Finalize on the last class block: lane-dense partial-sum writeback.
    @pl.when(c == nc - 1)
    def _():
        lse = m_ref[...] + jnp.log(l_ref[...])        # (tb, 1)
        loss = lse - confidence * gath_ref[...] - smooth_over_c * s_ref[...]
        if n_row_pad != 0:
            row = lax.broadcasted_iota(jnp.int32, (tb, 1), 0)
            loss = jnp.where(row < (n_rows - b * tb), loss, 0.0)
        out_ref[...] = jnp.broadcast_to(jnp.sum(loss), out_ref.shape)


def label_smoothing_loss(predictions, targets, smoothing=0.0, *, tb=None, tc=None):
    """predictions: (B, C) float, targets: (B,) int. Returns scalar float32."""
    B, C = predictions.shape
    confidence = 1.0 - smoothing

    itemsize = jnp.dtype(predictions.dtype).itemsize
    sublane = {4: 8, 2: 16, 1: 32}.get(itemsize, 8)

    # Batch tile: multiple of the sublane packing; keep >= 2 batch blocks when
    # B allows so the "parallel" grid axis can feed both v7x TensorCores.
    if tb is None:
        tb = min(256, _round_up(B, sublane))
        if B >= 2 * sublane:
            tb = min(tb, _round_up((B + 1) // 2, sublane))
    tb = max(sublane, _round_up(tb, sublane))

    # Class tile: lane-dense (multiple of 128), capped so a double-buffered
    # prediction tile (~8 MiB each) stays well inside v7x's 64 MiB VMEM while
    # amortizing the ~0.35 us per-grid-step overhead on v5e/v6e.
    if tc is None:
        tile_bytes_cap = 8 * 1024 * 1024
        tc_cap = max(128, (tile_bytes_cap // (tb * itemsize)) // 128 * 128)
        tc = min(_round_up(C, 128), tc_cap)
    tc = max(128, _round_up(tc, 128))

    Bp = _round_up(B, tb)
    Cp = _round_up(C, tc)

    preds = predictions                      # keep native dtype on the wire
    # Hoist the x[b, targets[b]] gather out of the kernel (only B elements).
    gathered = jnp.take_along_axis(
        predictions, targets.astype(jnp.int32)[:, None], axis=-1
    ).astype(jnp.float32)                    # (B, 1)

    if Bp != B or Cp != C:
        preds = jnp.pad(preds, ((0, Bp - B), (0, Cp - C)))
    if Bp != B:
        gathered = jnp.pad(gathered, ((0, Bp - B), (0, 0)))

    nb = Bp // tb
    nc = Cp // tc

    kernel = functools.partial(
        _label_smoothing_kernel,
        confidence=float(confidence),
        smooth_over_c=float(smoothing) / float(C),
        n_rows=B, n_cols=C, tb=tb, tc=tc,
        n_col_pad=Cp - C, n_row_pad=Bp - B)

    grid_spec = pltpu.PrefetchScalarGridSpec(
        num_scalar_prefetch=0,
        grid=(nb, nc),                               # reduction (C) axis last
        in_specs=[
            pl.BlockSpec((tb, tc), lambda b, c: (b, c)),
            pl.BlockSpec((tb, 1), lambda b, c: (b, 0)),
        ],
        out_specs=pl.BlockSpec((1, 8, 128), lambda b, c: (b, 0, 0)),
        scratch_shapes=[pltpu.VMEM((tb, 1), jnp.float32)] * 3,
    )

    cost = pl.CostEstimate(
        flops=4 * Bp * Cp,
        transcendentals=Bp * Cp,
        bytes_accessed=Bp * Cp * itemsize + Bp * 8 + nb * 8 * 128 * 4,
    )

    partials = pl.pallas_call(
        kernel,
        out_shape=jax.ShapeDtypeStruct((nb, 8, 128), jnp.float32),
        grid_spec=grid_spec,
        compiler_params=pltpu.CompilerParams(
            dimension_semantics=("parallel", "arbitrary"),
            vmem_limit_bytes=48 * 1024 * 1024,       # safe on v7x (64 MiB phys)
        ),
        cost_estimate=cost,
    )(preds, gathered)

    return jnp.sum(partials[:, 0, 0]) / B


def _reference(predictions, targets, smoothing=0.0):
    confidence = 1.0 - smoothing
    log_probs = jax.nn.log_softmax(predictions.astype(jnp.float32), axis=-1)
    nll = -jnp.take_along_axis(log_probs, targets[:, None], axis=-1)[:, 0]
    smooth = -jnp.mean(log_probs, axis=-1)
    return jnp.mean(confidence * nll + smoothing * smooth)


if __name__ == "__main__":
    key = jax.random.PRNGKey(0)
    k1, k2, k3, k4 = jax.random.split(key, 4)
    smoothing = 0.1

    # Small case: C padded up to the 128-lane tile (exercises the column mask).
    B, C = 8, 32
    predictions = jax.random.normal(k1, (B, C), dtype=jnp.float32)
    targets = jax.random.randint(k2, (B,), 0, C, dtype=jnp.int32)
    loss = jax.block_until_ready(
        label_smoothing_loss(predictions, targets, smoothing=smoothing))
    ref = _reference(predictions, targets, smoothing=smoothing)
    assert jnp.allclose(loss, ref, atol=1e-5, rtol=1e-5), (loss, ref)

    # Unaligned case: streamed class axis (nc > 1), column + row padding.
    B2, C2 = 10, 300
    predictions2 = jax.random.normal(k3, (B2, C2), dtype=jnp.float32)
    targets2 = jax.random.randint(k4, (B2,), 0, C2, dtype=jnp.int32)
    loss2 = jax.block_until_ready(
        label_smoothing_loss(predictions2, targets2, smoothing=smoothing, tc=128))
    ref2 = _reference(predictions2, targets2, smoothing=smoothing)
    assert jnp.allclose(loss2, ref2, atol=1e-5, rtol=1e-5), (loss2, ref2)

    print("KERNEL_OK")
</pallas_src>

<mosaic_0001>
module attributes {stable_mosaic.version = 11 : i64} {
  func.func @_label_smoothing_kernel(%arg0: i32, %arg1: i32, %arg2: memref<8x128xf32, #tpu.memory_space<vmem>>, %arg3: memref<8x1xf32, #tpu.memory_space<vmem>>, %arg4: memref<1x8x128xf32, #tpu.memory_space<vmem>>, %arg5: memref<8x1xf32, #tpu.memory_space<vmem>>, %arg6: memref<8x1xf32, #tpu.memory_space<vmem>>, %arg7: memref<8x1xf32, #tpu.memory_space<vmem>>) attributes {dimension_semantics = [#tpu.dimension_semantics<parallel>, #tpu.dimension_semantics<arbitrary>], iteration_bounds = array<i64: 1, 1>, scalar_prefetch = 0 : i64, scratch_operands = 3 : i64, tpu.core_type = #tpu.core_type<tc>, window_params = [{transform_indices = @transform_0, window_bounds = array<i64: 8, 128>}, {transform_indices = @transform_1, window_bounds = array<i64: 8, 1>}, {transform_indices = @transform_2, window_bounds = array<i64: 1, 8, 128>}]} {
    %c0_i32 = arith.constant 0 : i32
    %0 = arith.cmpi eq, %arg1, %c0_i32 : i32
    %1 = arith.extui %0 : i1 to i32
    %c0_i32_0 = arith.constant 0 : i32
    %2 = arith.cmpi ne, %1, %c0_i32_0 : i32
    scf.if %2 {
      %cst = arith.constant 0xFF800000 : f32
      %13 = vector.broadcast %cst : f32 to vector<8x1xf32>
      %c0_8 = arith.constant 0 : index
      %c0_9 = arith.constant 0 : index
      %14 = vector.load %arg5[%c0_8, %c0_9] : memref<8x1xf32, #tpu.memory_space<vmem>>, vector<8x1xf32>
      tpu.vector_store %arg5[%c0_8, %c0_9], %13 {strides = array<i32>} : memref<8x1xf32, #tpu.memory_space<vmem>>, vector<8x1xf32>,
      %cst_10 = arith.constant 0.000000e+00 : f32
      %15 = vector.broadcast %cst_10 : f32 to vector<8x1xf32>
      %c0_11 = arith.constant 0 : index
      %c0_12 = arith.constant 0 : index
      %16 = vector.load %arg6[%c0_11, %c0_12] : memref<8x1xf32, #tpu.memory_space<vmem>>, vector<8x1xf32>
      tpu.vector_store %arg6[%c0_11, %c0_12], %15 {strides = array<i32>} : memref<8x1xf32, #tpu.memory_space<vmem>>, vector<8x1xf32>,
      %cst_13 = arith.constant 0.000000e+00 : f32
      %17 = vector.broadcast %cst_13 : f32 to vector<8x1xf32>
      %c0_14 = arith.constant 0 : index
      %c0_15 = arith.constant 0 : index
      %18 = vector.load %arg7[%c0_14, %c0_15] : memref<8x1xf32, #tpu.memory_space<vmem>>, vector<8x1xf32>
      tpu.vector_store %arg7[%c0_14, %c0_15], %17 {strides = array<i32>} : memref<8x1xf32, #tpu.memory_space<vmem>>, vector<8x1xf32>,
    } else {
    }
    %c0 = arith.constant 0 : index
    %c0_1 = arith.constant 0 : index
    %3 = vector.load %arg2[%c0, %c0_1] : memref<8x128xf32, #tpu.memory_space<vmem>>, vector<8x128xf32>
    %c0_i32_2 = arith.constant 0 : i32
    %4 = arith.cmpi slt, %arg1, %c0_i32_2 : i32
    %5 = arith.extui %4 : i1 to i32
    %c0_i32_3 = arith.constant 0 : i32
    %6 = arith.cmpi ne, %5, %c0_i32_3 : i32
    scf.if %6 {
      %c0_8 = arith.constant 0 : index
      %c0_9 = arith.constant 0 : index
      %13 = vector.load %arg5[%c0_8, %c0_9] : memref<8x1xf32, #tpu.memory_space<vmem>>, vector<8x1xf32>
      %cst = arith.constant dense<0xFF800000> : vector<8xf32>
      %14 = vector.multi_reduction <maximumf>, %3, %cst [1] : vector<8x128xf32> to vector<8xf32>
      %15 = vector.shape_cast %14 : vector<8xf32> to vector<8x1xf32>
      %16 = arith.maximumf %13, %15 : vector<8x1xf32>
      %17 = arith.subf %13, %16 : vector<8x1xf32>
      %18 = math.exp %17 : vector<8x1xf32>
      %c0_10 = arith.constant 0 : index
      %c0_11 = arith.constant 0 : index
      %19 = vector.load %arg6[%c0_10, %c0_11] : memref<8x1xf32, #tpu.memory_space<vmem>>, vector<8x1xf32>
      %20 = arith.mulf %18, %19 : vector<8x1xf32>
      %21 = vector.broadcast %16 : vector<8x1xf32> to vector<8x128xf32>
      %22 = arith.subf %3, %21 : vector<8x128xf32>
      %23 = math.exp %22 : vector<8x128xf32>
      %cst_12 = arith.constant dense<0.000000e+00> : vector<8xf32>
      %24 = vector.multi_reduction <add>, %23, %cst_12 [1] : vector<8x128xf32> to vector<8xf32>
      %25 = vector.shape_cast %24 : vector<8xf32> to vector<8x1xf32>
      %26 = arith.addf %20, %25 : vector<8x1xf32>
      %c0_13 = arith.constant 0 : index
      %c0_14 = arith.constant 0 : index
      %27 = vector.load %arg6[%c0_13, %c0_14] : memref<8x1xf32, #tpu.memory_space<vmem>>, vector<8x1xf32>
      tpu.vector_store %arg6[%c0_13, %c0_14], %26 {strides = array<i32>} : memref<8x1xf32, #tpu.memory_space<vmem>>, vector<8x1xf32>,
      %c0_15 = arith.constant 0 : index
      %c0_16 = arith.constant 0 : index
      %28 = vector.load %arg5[%c0_15, %c0_16] : memref<8x1xf32, #tpu.memory_space<vmem>>, vector<8x1xf32>
      tpu.vector_store %arg5[%c0_15, %c0_16], %16 {strides = array<i32>} : memref<8x1xf32, #tpu.memory_space<vmem>>, vector<8x1xf32>,
      %c0_17 = arith.constant 0 : index
      %c0_18 = arith.constant 0 : index
      %29 = vector.load %arg7[%c0_17, %c0_18] : memref<8x1xf32, #tpu.memory_space<vmem>>, vector<8x1xf32>
      %cst_19 = arith.constant dense<0.000000e+00> : vector<8xf32>
      %30 = vector.multi_reduction <add>, %3, %cst_19 [1] : vector<8x128xf32> to vector<8xf32>
      %31 = vector.shape_cast %30 : vector<8xf32> to vector<8x1xf32>
      %32 = arith.addf %29, %31 : vector<8x1xf32>
      %c0_20 = arith.constant 0 : index
      %c0_21 = arith.constant 0 : index
      %33 = vector.load %arg7[%c0_20, %c0_21] : memref<8x1xf32, #tpu.memory_space<vmem>>, vector<8x1xf32>
      tpu.vector_store %arg7[%c0_20, %c0_21], %32 {strides = array<i32>} : memref<8x1xf32, #tpu.memory_space<vmem>>, vector<8x1xf32>,
    } else {
    }
    %c0_i32_4 = arith.constant 0 : i32
    %7 = arith.cmpi eq, %arg1, %c0_i32_4 : i32
    %8 = arith.extui %7 : i1 to i32
    %c0_i32_5 = arith.constant 0 : i32
    %9 = arith.cmpi ne, %8, %c0_i32_5 : i32
    scf.if %9 {
      %13 = tpu.iota {dimensions = array<i32: 1>} : vector<8x128xi32>
      %c128_i32 = arith.constant 128 : i32
      %14 = arith.muli %arg1, %c128_i32 : i32
      %c32_i32 = arith.constant 32 : i32
      %15 = arith.subi %c32_i32, %14 : i32
      %16 = vector.broadcast %15 : i32 to vector<8x128xi32>
      %17 = arith.cmpi slt, %13, %16 : vector<8x128xi32>
      %cst = arith.constant 0xFF800000 : f32
      %18 = vector.broadcast %cst : f32 to vector<8x128xf32>
      %19 = arith.select %17, %3, %18 : vector<8x128xi1>, vector<8x128xf32>
      %cst_8 = arith.constant 0.000000e+00 : f32
      %20 = vector.broadcast %cst_8 : f32 to vector<8x128xf32>
      %21 = arith.select %17, %3, %20 : vector<8x128xi1>, vector<8x128xf32>
      %c0_9 = arith.constant 0 : index
      %c0_10 = arith.constant 0 : index
      %22 = vector.load %arg5[%c0_9, %c0_10] : memref<8x1xf32, #tpu.memory_space<vmem>>, vector<8x1xf32>
      %cst_11 = arith.constant dense<0xFF800000> : vector<8xf32>
      %23 = vector.multi_reduction <maximumf>, %19, %cst_11 [1] : vector<8x128xf32> to vector<8xf32>
      %24 = vector.shape_cast %23 : vector<8xf32> to vector<8x1xf32>
      %25 = arith.maximumf %22, %24 : vector<8x1xf32>
      %26 = arith.subf %22, %25 : vector<8x1xf32>
      %27 = math.exp %26 : vector<8x1xf32>
      %c0_12 = arith.constant 0 : index
      %c0_13 = arith.constant 0 : index
      %28 = vector.load %arg6[%c0_12, %c0_13] : memref<8x1xf32, #tpu.memory_space<vmem>>, vector<8x1xf32>
      %29 = arith.mulf %27, %28 : vector<8x1xf32>
      %30 = vector.broadcast %25 : vector<8x1xf32> to vector<8x128xf32>
      %31 = arith.subf %19, %30 : vector<8x128xf32>
      %32 = math.exp %31 : vector<8x128xf32>
      %cst_14 = arith.constant dense<0.000000e+00> : vector<8xf32>
      %33 = vector.multi_reduction <add>, %32, %cst_14 [1] : vector<8x128xf32> to vector<8xf32>
      %34 = vector.shape_cast %33 : vector<8xf32> to vector<8x1xf32>
      %35 = arith.addf %29, %34 : vector<8x1xf32>
      %c0_15 = arith.constant 0 : index
      %c0_16 = arith.constant 0 : index
      %36 = vector.load %arg6[%c0_15, %c0_16] : memref<8x1xf32, #tpu.memory_space<vmem>>, vector<8x1xf32>
      tpu.vector_store %arg6[%c0_15, %c0_16], %35 {strides = array<i32>} : memref<8x1xf32, #tpu.memory_space<vmem>>, vector<8x1xf32>,
      %c0_17 = arith.constant 0 : index
      %c0_18 = arith.constant 0 : index
      %37 = vector.load %arg5[%c0_17, %c0_18] : memref<8x1xf32, #tpu.memory_space<vmem>>, vector<8x1xf32>
      tpu.vector_store %arg5[%c0_17, %c0_18], %25 {strides = array<i32>} : memref<8x1xf32, #tpu.memory_space<vmem>>, vector<8x1xf32>,
      %c0_19 = arith.constant 0 : index
      %c0_20 = arith.constant 0 : index
      %38 = vector.load %arg7[%c0_19, %c0_20] : memref<8x1xf32, #tpu.memory_space<vmem>>, vector<8x1xf32>
      %cst_21 = arith.constant dense<0.000000e+00> : vector<8xf32>
      %39 = vector.multi_reduction <add>, %21, %cst_21 [1] : vector<8x128xf32> to vector<8xf32>
      %40 = vector.shape_cast %39 : vector<8xf32> to vector<8x1xf32>
      %41 = arith.addf %38, %40 : vector<8x1xf32>
      %c0_22 = arith.constant 0 : index
      %c0_23 = arith.constant 0 : index
      %42 = vector.load %arg7[%c0_22, %c0_23] : memref<8x1xf32, #tpu.memory_space<vmem>>, vector<8x1xf32>
      tpu.vector_store %arg7[%c0_22, %c0_23], %41 {strides = array<i32>} : memref<8x1xf32, #tpu.memory_space<vmem>>, vector<8x1xf32>,
    } else {
    }
    %c0_i32_6 = arith.constant 0 : i32
    %10 = arith.cmpi eq, %arg1, %c0_i32_6 : i32
    %11 = arith.extui %10 : i1 to i32
    %c0_i32_7 = arith.constant 0 : i32
    %12 = arith.cmpi ne, %11, %c0_i32_7 : i32
    scf.if %12 {
      %c0_8 = arith.constant 0 : index
      %c0_9 = arith.constant 0 : index
      %13 = vector.load %arg5[%c0_8, %c0_9] : memref<8x1xf32, #tpu.memory_space<vmem>>, vector<8x1xf32>
      %c0_10 = arith.constant 0 : index
      %c0_11 = arith.constant 0 : index
      %14 = vector.load %arg6[%c0_10, %c0_11] : memref<8x1xf32, #tpu.memory_space<vmem>>, vector<8x1xf32>
      %15 = math.log %14 : vector<8x1xf32>
      %16 = arith.addf %13, %15 : vector<8x1xf32>
      %c0_12 = arith.constant 0 : index
      %c0_13 = arith.constant 0 : index
      %17 = vector.load %arg3[%c0_12, %c0_13] : memref<8x1xf32, #tpu.memory_space<vmem>>, vector<8x1xf32>
      %cst = arith.constant 0.899999976 : f32
      %18 = vector.broadcast %cst : f32 to vector<8x1xf32>
      %19 = arith.mulf %18, %17 : vector<8x1xf32>
      %20 = arith.subf %16, %19 : vector<8x1xf32>
      %c0_14 = arith.constant 0 : index
      %c0_15 = arith.constant 0 : index
      %21 = vector.load %arg7[%c0_14, %c0_15] : memref<8x1xf32, #tpu.memory_space<vmem>>, vector<8x1xf32>
      %cst_16 = arith.constant 3.125000e-03 : f32
      %22 = vector.broadcast %cst_16 : f32 to vector<8x1xf32>
      %23 = arith.mulf %22, %21 : vector<8x1xf32>
      %24 = arith.subf %20, %23 : vector<8x1xf32>
      %25 = vector.shape_cast %24 : vector<8x1xf32> to vector<1x8x1xf32>
      %cst_17 = arith.constant dense<0.000000e+00> : vector<1xf32>
      %26 = vector.multi_reduction <add>, %25, %cst_17 [1, 2] : vector<1x8x1xf32> to vector<1xf32>
      %27 = vector.shape_cast %26 : vector<1xf32> to vector<1x1x1xf32>
      %28 = vector.extract %27[0, 0, 0] : f32 from vector<1x1x1xf32>
      %29 = vector.broadcast %28 : f32 to vector<1x8x128xf32>
      %c0_18 = arith.constant 0 : index
      %c0_19 = arith.constant 0 : index
      %c0_20 = arith.constant 0 : index
      %30 = vector.load %arg4[%c0_18, %c0_19, %c0_20] : memref<1x8x128xf32, #tpu.memory_space<vmem>>, vector<1x8x128xf32>
      tpu.vector_store %arg4[%c0_18, %c0_19, %c0_20], %29 {strides = array<i32>} : memref<1x8x128xf32, #tpu.memory_space<vmem>>, vector<1x8x128xf32>,
    } else {
    }
    return
  }
  func.func @transform_0(%arg0: i32, %arg1: i32) -> (i32, i32) {
    %c0_i32 = arith.constant 0 : i32
    return %arg0, %arg1 : i32, i32
  }
  func.func @transform_1(%arg0: i32, %arg1: i32) -> (i32, i32) {
    %c0_i32 = arith.constant 0 : i32
    %c0_i32_0 = arith.constant 0 : i32
    return %arg0, %c0_i32 : i32, i32
  }
  func.func @transform_2(%arg0: i32, %arg1: i32) -> (i32, i32, i32) {
    %c0_i32 = arith.constant 0 : i32
    %c0_i32_0 = arith.constant 0 : i32
    %c0_i32_1 = arith.constant 0 : i32
    return %arg0, %c0_i32, %c0_i32_0 : i32, i32, i32
  }
}

</mosaic_0001>

<bundles_post_ra>
// kernel: tpu_custom_call.1
= control target key start
LH: loop header
LB: loop body
LE: loop exit
PB: predicated region body
PF: predicated region fallthrough
CT: control target
= control target key end

     0   :  { %v56_v0 = vlaneseq  ;;  %s201_s0 = inlined_call_operand.vmem [shape: f32[8,128], index: 0, kind: input, shape index: {}]   ;;  %s202_s1 = inlined_call_operand.vmem [shape: f32[8,1], index: 1, kind: input, shape index: {}]   ;;  %s203_s2 = inlined_call_operand.hbm [shape: f32[1,8,128], index: 2, kind: output, shape index: {}]  }
   0x1   :  { %7 = vsyncpa [#allocation6], 0  ;;  %v20_v1 = vld [vmem:[%s201_s0] sm:$0xff]  ;;  %vm16_vm1 = vcmask 7168   ;;  %v164_v4 = vmov -inf   ;;  %v165_v5 = vmov 0  }
   0x2   :  { %v57_v2 = vand.u32 127, %v56_v0  ;;  %17 = vst.msk [vmem:[#allocation2] sm:$0xff] %vm16_vm1, %v164_v4  ;;  %135 = vset.pattern.permute.xlu0 %v165_v5  ;;  %v166_v6 = vmov 0.0   ;;  %v97_v26 = vld [vmem:[%s202_s1] sm:$0xff]  ;;  %s167_s1 = smov [#allocation5]  }
   0x3   :  { %18 = vst.msk [vmem:[#allocation3] sm:$0xff] %vm16_vm1, %v166_v6  ;;  %19 = vst.msk [vmem:[#allocation4] sm:$0xff] %vm16_vm1, %v166_v6  ;;  %v98_v30 = vmul.f32 0.9, %v97_v26  ;;  %s121_s12 = sshll.u32 %s167_s1, 4  ;;  %s122_s12 = int_to_ptr.vmem [resolvable:$true] %s121_s12 }
   0x4   :  { %vm61_vm0 = vcmp.lt.s32.totalorder %v57_v2, 32  ;;  %s142_s14 = scalar_lea.vmem %s122_s12, 128  ;;  %p147_p1 = scmp.lt.s32.totalorder %s122_s12, %s122_s12 }
   0x5   :  { %v62_v3 = vsel %vm61_vm0, %v20_v1, -inf  ;;  %v63_v15 = vsel %vm61_vm0, %v20_v1, 0.0  ;;  %p143_p0 = scmp.ne.s32.totalorder %s122_s12, %s142_s14  ;;  %p148_p2 = scmp.lt.s32.totalorder %s142_s14, %s142_s14 }
   0x6   :  { %65 = vmax.xlane.f32.xlu0 %v62_v3 }
   0x7   :  { %p149_p3 = por %p148_p2, %p147_p1 }
   0x9   :  { %v64_v7 = vld [vmem:[#allocation2] sm:$0xff]  ;;  %p150_p4 = pnand %p149_p3, %p143_p0 }
   0xa   :  { %v71_v18 = vld [vmem:[#allocation3] sm:$0xff]  ;;  %v87_v22 = vld [vmem:[#allocation4] sm:$0xff] }
  0x8f   :  { %v66_v8 = vpop.xlane.xlu0 %65 }
  0x90   :  { %v67_v9 = vmax.f32 %v64_v7, %v66_v8 }
  0x92   :  { %v68_v10 = vsub.f32 %v64_v7, %v67_v9  ;;  %86 = vst.msk [vmem:[#allocation2] sm:$0xff] %vm16_vm1, %v67_v9  ;;  %75 = vperm.xlu0 %135, %v67_v9  }
  0x94   :  { %v69_v16 = vmul.f32 1.442695, %v68_v10 }
  0x99   :  { %v92_v31 = vld [vmem:[#allocation2] sm:$0xff] }
 0x10d   :  { %v76_v11 = vpop.permute.xlu0 %75 }
 0x10e   :  { %v78_v12 = vsub.f32 %v62_v3, %v76_v11 }
 0x110   :  { %v79_v13 = vmul.f32 1.442695, %v78_v12 }
 0x112   :  { %136 = vpow2.f32 %v79_v13 }
 0x113   :  { %138 = vpow2.f32 %v69_v16 }
 0x11f   :  { %v137_v14 = vpop.eup %136 }
 0x120   :  { %81 = vadd.xlane.f32.xlu1 %v137_v14  ;;  %v139_v17 = vpop.eup %138 }
 0x121   :  { %v72_v19 = vmul.f32 %v139_v17, %v71_v18 }
 0x124   :  { %88 = vadd.xlane.f32.xlu1 %v63_v15 }
 0x1a9   :  { %v82_v20 = vpop.xlane.xlu1 %81 }
 0x1aa   :  { %v83_v21 = vadd.f32 %v82_v20, %v72_v19 }
 0x1ac   :  { %85 = vst.msk [vmem:[#allocation3] sm:$0xff] %vm16_vm1, %v83_v21 }
 0x1ad   :  { %v89_v23 = vpop.xlane.xlu1 %88 }
 0x1ae   :  { %v90_v24 = vadd.f32 %v89_v23, %v87_v22 }
 0x1b0   :  { %91 = vst.msk [vmem:[#allocation4] sm:$0xff] %vm16_vm1, %v90_v24 }
 0x1b3   :  { %v93_v25 = vld [vmem:[#allocation3] sm:$0xff] }
 0x1b4   :  { %140 = vlog2.f32 %v93_v25 }
 0x1b7   :  { %v100_v28 = vld [vmem:[#allocation4] sm:$0xff] }
 0x1b8   :  { %v101_v33 = vmul.f32 0.003125, %v100_v28 }
 0x1c1   :  { %v141_v27 = vpop.eup %140 }
 0x1c2   :  { %v95_v29 = vmul.f32 0.6931472, %v141_v27 }
 0x1c4   :  { %v96_v32 = vadd.f32 %v95_v29, %v92_v31 }
 0x1c6   :  { %v99_v34 = vsub.f32 %v96_v32, %v98_v30 }
 0x1c8   :  { %v102_v35 = vsub.f32 %v99_v34, %v101_v33 }
 0x1ca   :  { %v103_v36 = vsel %vm16_vm1, %v102_v35, 0.0 }
 0x1cb   :  { %104 = vadd.xlane.f32.xlu1 %v103_v36 }
 0x254   :  { %v105_v37 = vpop.xlane.xlu1 %104 }
 0x255   :  { %v106_v38 = vrot.slane %v105_v37, 4 }
 0x257   :  { %v107_v39 = vadd.f32 %v106_v38, %v105_v37 }
 0x259   :  { %v108_v40 = vrot.slane %v107_v39, 2 }
 0x25b   :  { %v109_v41 = vadd.f32 %v108_v40, %v107_v39 }
 0x25d   :  { %v110_v42 = vrot.slane %v109_v41, 1 }
 0x25f   :  { %v111_v43 = vadd.f32 %v110_v42, %v109_v41 }
 0x261   :  { %129 = vpush %v111_v43 }
 0x292   :  { %s130_s13 = spop %129 }
 0x293   :  { %v113_v44 = vstv %s130_s13 }
 0x294   :  { %114 = vst [vmem:[#allocation5] sm:$0xff] %v113_v44 }
 0x295   :  { %153 = shalt.err (!%p150_p4)
}
 0x296   :  { %124 = dma.vmem_to_hbm [thread:$0]  %s122_s12, 128, %s203_s2, [#allocation6]  }
 0x297   :  { %162 = dma.done.wait [#allocation6], 128  }
 0x298   :  { %163 = vsyncadd [#allocation6], 4294967168 }
 0x299   :  { %128 = vsyncpa [#allocation6], 1 }

</bundles_post_ra>
